<compile_context>
chip_gen: v6e
topology: v6e:2x2x1
jax: 0.10.0
libtpu: 0.0.40
codegen_flags: <defaults>
</compile_context>

<pallas_src>
import jax
import jax.numpy as jnp
from jax.experimental import pallas as pl
from jax.experimental.pallas import tpu as pltpu


def _ceil_kernel(x_ref, o_ref):
    # Elementwise ceil on the current VMEM tile (single VPU op per element).
    o_ref[...] = jnp.ceil(x_ref[...])


def ceil_pallas(x: jax.Array, *, target_block_bytes: int = 4 * 1024 * 1024) -> jax.Array:
    """Elementwise ceil via a Pallas TPU kernel (torch.ceil semantics)."""
    if not jnp.issubdtype(x.dtype, jnp.floating):
        # torch.ceil on integral inputs is the identity (and JAX would promote
        # to float, breaking the declared out dtype) -> pass through unchanged.
        return x

    orig_shape = x.shape
    dtype = x.dtype
    n = x.size
    if n == 0:
        return x

    itemsize = jnp.dtype(dtype).itemsize
    LANES = 128

    # Pick the widest lane-dense width that divides n -> no pad, no slice.
    width = None
    for w in (4096, 2048, 1024, 512, 256, 128):
        if n % w == 0:
            width = w
            break

    x_flat = x.reshape(-1)
    padded = False
    if width is None:
        # Ragged fallback: pad only up to the next multiple of 128 elements.
        width = LANES
        n_total = pl.cdiv(n, LANES) * LANES
        x_flat = jnp.pad(x_flat, (0, n_total - n))
        padded = True
    else:
        n_total = n

    rows = n_total // width
    x2d = x_flat.reshape(rows, width)

    # Sublane packing granularity: 8 rows for 32-bit, 16 for bf16, 32 for 8-bit.
    row_quantum = 8 * max(1, 4 // itemsize)

    # ~target_block_bytes per buffer, rounded down to the row quantum.
    tgt_rows = max(row_quantum, target_block_bytes // (width * itemsize))
    tgt_rows = max(row_quantum, (tgt_rows // row_quantum) * row_quantum)
    if rows <= tgt_rows:
        block_rows = rows  # full extent -> always a legal block shape
    else:
        block_rows = tgt_rows  # multiple of (8 * pack); edge block is masked

    grid = (pl.cdiv(rows, block_rows),)

    out2d = pl.pallas_call(
        _ceil_kernel,
        out_shape=jax.ShapeDtypeStruct((rows, width), dtype),
        grid=grid,
        in_specs=[pl.BlockSpec((block_rows, width), lambda i: (i, 0))],
        out_specs=pl.BlockSpec((block_rows, width), lambda i: (i, 0)),
        compiler_params=pltpu.CompilerParams(
            dimension_semantics=("parallel",),
            vmem_limit_bytes=32 << 20,
        ),
        cost_estimate=pl.CostEstimate(
            flops=n_total,
            transcendentals=0,
            bytes_accessed=2 * n_total * itemsize,
        ),
    )(x2d)

    out_flat = out2d.reshape(-1)
    if padded:
        out_flat = out_flat[:n]
    return out_flat.reshape(orig_shape)


if __name__ == "__main__":
    key = jax.random.PRNGKey(0)

    # Small NCHW input consistent with a typical conv-style feature map.
    x = jax.random.normal(key, (2, 4, 16, 16), dtype=jnp.float32) * 3.0
    y = ceil_pallas(x)
    jax.block_until_ready(y)
    y_ref = jnp.ceil(x)
    assert y.shape == x.shape and y.dtype == x.dtype
    assert bool(jnp.all(y == y_ref))

    # Ragged-size input (not a multiple of 128) exercises the fallback path.
    x2 = jax.random.normal(jax.random.PRNGKey(1), (2, 3, 5, 7), dtype=jnp.float32) * 5.0
    y2 = ceil_pallas(x2)
    jax.block_until_ready(y2)
    assert bool(jnp.all(y2 == jnp.ceil(x2)))

    print("KERNEL_OK")
</pallas_src>

<mosaic_0001>
module attributes {stable_mosaic.version = 11 : i64} {
  func.func @_ceil_kernel(%arg0: i32, %arg1: memref<1x2048xf32, #tpu.memory_space<vmem>>, %arg2: memref<1x2048xf32, #tpu.memory_space<vmem>>) attributes {dimension_semantics = [#tpu.dimension_semantics<parallel>], iteration_bounds = array<i64: 1>, scalar_prefetch = 0 : i64, scratch_operands = 0 : i64, tpu.core_type = #tpu.core_type<tc>, window_params = [{transform_indices = @transform_0, window_bounds = array<i64: 1, 2048>}, {transform_indices = @transform_1, window_bounds = array<i64: 1, 2048>}]} {
    %c0 = arith.constant 0 : index
    %c0_0 = arith.constant 0 : index
    %0 = vector.load %arg1[%c0, %c0_0] : memref<1x2048xf32, #tpu.memory_space<vmem>>, vector<1x2048xf32>
    %1 = math.ceil %0 : vector<1x2048xf32>
    %c0_1 = arith.constant 0 : index
    %c0_2 = arith.constant 0 : index
    %2 = vector.load %arg2[%c0_1, %c0_2] : memref<1x2048xf32, #tpu.memory_space<vmem>>, vector<1x2048xf32>
    tpu.vector_store %arg2[%c0_1, %c0_2], %1 {strides = array<i32>} : memref<1x2048xf32, #tpu.memory_space<vmem>>, vector<1x2048xf32>,
    return
  }
  func.func @transform_0(%arg0: i32) -> (i32, i32) {
    %c0_i32 = arith.constant 0 : i32
    %c0_i32_0 = arith.constant 0 : i32
    return %arg0, %c0_i32 : i32, i32
  }
  func.func @transform_1(%arg0: i32) -> (i32, i32) {
    %c0_i32 = arith.constant 0 : i32
    %c0_i32_0 = arith.constant 0 : i32
    return %arg0, %c0_i32 : i32, i32
  }
}

</mosaic_0001>

<bundles_post_ra>
// kernel: tpu_custom_call.1
= control target key start
LH: loop header
LB: loop body
LE: loop exit
PB: predicated region body
PF: predicated region fallthrough
CT: control target
= control target key end

     0   :  { %6 = vsyncpa [#allocation3], 0  ;;  %s106_s0 = inlined_call_operand.hbm [shape: f32[1,2048], index: 0, kind: input, shape index: {}]   ;;  %s107_s1 = inlined_call_operand.hbm [shape: f32[1,2048], index: 1, kind: output, shape index: {}]  }
   0x1   :  { %7 = vsyncpa [#allocation4], 0  ;;  %s88_s6 = smov [#allocation2]  }
   0x2   :  { %s14_s7 = sshll.u32 %s88_s6, 4  ;;  %s15_s7 = int_to_ptr.vmem [resolvable:$true] %s14_s7 }
   0x3   :  { %s52_s8 = scalar_lea.vmem %s15_s7, 256  ;;  %p57_p1 = scmp.lt.s32.totalorder %s15_s7, %s15_s7 }
   0x4   :  { %p53_p0 = scmp.ne.s32.totalorder %s15_s7, %s52_s8  ;;  %p58_p2 = scmp.lt.s32.totalorder %s52_s8, %s52_s8 }
   0x6   :  { %p59_p3 = por %p58_p2, %p57_p1 }
   0x8   :  { %p60_p4 = pnand %p59_p3, %p53_p0 }
   0xa   :  { %63 = shalt.err (!%p60_p4)
}
   0xb   :  { %17 = dma.hbm_to_vmem [thread:$0]  %s106_s0, 256, %s15_s7, [#allocation3]  }
   0xc   :  { %84 = dma.done.wait [#allocation3], 256  }
   0xd   :  { %85 = vsyncadd [#allocation3], 4294967040  ;;  %s89_s11 = smov [#allocation5]   ;;  %v21_v0 = vld [vmem:[#allocation2] sm:$0xff]  ;;  %v22_v1 = vld [vmem:[#allocation2 + $0x8] sm:$0xff] }
   0xe   :  { %s33_s12 = sshll.u32 %s89_s11, 4  ;;  %v23_v2 = vceil.f32 %v21_v0  ;;  %v24_v3 = vceil.f32 %v22_v1  ;;  %s34_s12 = int_to_ptr.vmem [resolvable:$true] %s33_s12 }
   0xf   :  { %s64_s13 = scalar_lea.vmem %s34_s12, 256  ;;  %p69_p6 = scmp.lt.s32.totalorder %s34_s12, %s34_s12 }
  0x10   :  { %25 = vst [vmem:[#allocation5] sm:$0xff] %v23_v2  ;;  %26 = vst [vmem:[#allocation5 + $0x8] sm:$0xff] %v24_v3  ;;  %p65_p5 = scmp.ne.s32.totalorder %s34_s12, %s64_s13  ;;  %p70_p7 = scmp.lt.s32.totalorder %s64_s13, %s64_s13 }
  0x12   :  { %p71_p8 = por %p70_p7, %p69_p6 }
  0x14   :  { %p72_p9 = pnand %p71_p8, %p65_p5 }
  0x16   :  { %75 = shalt.err (!%p72_p9)
}
  0x17   :  { %36 = dma.vmem_to_hbm [thread:$0]  %s34_s12, 256, %s107_s1, [#allocation4]  }
  0x18   :  { %86 = dma.done.wait [#allocation4], 256  }
  0x19   :  { %87 = vsyncadd [#allocation4], 4294967040 }
  0x1a   :  { %40 = vsyncpa [#allocation3], 1 }
  0x1b   :  { %41 = vsyncpa [#allocation4], 1 }

</bundles_post_ra>
